<compile_context>
chip_gen: v7x
topology: tpu7x:2x2x1
jax: 0.10.0
libtpu: 0.0.40
codegen_flags: <defaults>
</compile_context>

<pallas_src>
import functools

import jax
import jax.numpy as jnp
import numpy as np
from jax import lax
from jax.experimental import pallas as pl
from jax.experimental.pallas import tpu as pltpu

PAD_token = 1

_TILE_BUDGET = 24 * 1024 * 1024   # per-grid-step working-set target (fits v7x VMEM)
_VMEM_LIMIT = 48 * 1024 * 1024    # explicit scoped-VMEM limit for every pallas_call


def _round_up(x, m):
    return ((x + m - 1) // m) * m


def _cparams(sem):
    return pltpu.CompilerParams(dimension_semantics=sem,
                                vmem_limit_bytes=_VMEM_LIMIT)


# ----------------------------------------------------------------------------
# Single-buffered BlockSpecs for grid-invariant (weight/bias) operands.
# Probed once; falls back to default double buffering if unsupported.
# ----------------------------------------------------------------------------
_SINGLE_BUF_OK = None


def _copy_probe_kernel(x_ref, o_ref):
    o_ref[...] = x_ref[...]


def _single_buffer_supported():
    global _SINGLE_BUF_OK
    if _SINGLE_BUF_OK is None:
        try:
            spec = pl.BlockSpec((8, 128), lambda i: (0, 0),
                                pipeline_mode=pl.Buffered(1))
            f = pl.pallas_call(
                _copy_probe_kernel,
                out_shape=jax.ShapeDtypeStruct((8, 128), jnp.float32),
                grid=(1,),
                in_specs=[spec],
                out_specs=pl.BlockSpec((8, 128), lambda i: (0, 0)))
            jax.block_until_ready(f(jnp.zeros((8, 128), jnp.float32)))
            _SINGLE_BUF_OK = True
        except Exception:
            _SINGLE_BUF_OK = False
    return _SINGLE_BUF_OK


def _wspec(block_shape, index_map):
    """BlockSpec for an operand whose index_map is constant over the grid."""
    if _single_buffer_supported():
        return pl.BlockSpec(block_shape, index_map, pipeline_mode=pl.Buffered(1))
    return pl.BlockSpec(block_shape, index_map)


def _pick_row_tile(unit_rows, n_units, bytes_per_row, budget_bytes,
                   target_rows=2048):
    """Largest row tile = unit_rows * k (k | n_units) within budget & target."""
    max_rows = min(target_rows,
                   max(unit_rows, budget_bytes // max(bytes_per_row, 1)))
    best = 1
    for k in range(1, n_units + 1):
        if n_units % k == 0 and unit_rows * k <= max_rows:
            best = k
    return unit_rows * best


# ----------------------------------------------------------------------------
# Kernel 1: gi[d] = x @ wih_T[d] + bih[d]  for both directions, all timesteps.
# ----------------------------------------------------------------------------
def _gates_kernel(x_ref, w_ref, b_ref, o_ref):
    x = x_ref[...].astype(jnp.bfloat16)                       # bf16 MXU operand
    g0 = jnp.dot(x, w_ref[0], preferred_element_type=jnp.float32) + b_ref[0]
    g1 = jnp.dot(x, w_ref[1], preferred_element_type=jnp.float32) + b_ref[1]
    o_ref[0] = g0.astype(o_ref.dtype)
    o_ref[1] = g1.astype(o_ref.dtype)


def precompute_gates(x2d, wih_T, bih, rb):
    """x2d: (rows, Hp) f32; wih_T: (2, Hp, 3Hp) bf16; bih: (2, 1, 3Hp) f32
    -> (2, rows, 3Hp) bf16."""
    rows, Hp = x2d.shape
    G3 = wih_T.shape[2]
    nR = rows // rb
    grid_spec = pltpu.PrefetchScalarGridSpec(
        num_scalar_prefetch=0,
        grid=(nR,),
        in_specs=[pl.BlockSpec((rb, Hp), lambda r: (r, 0)),
                  _wspec((2, Hp, G3), lambda r: (0, 0, 0)),
                  _wspec((2, 1, G3), lambda r: (0, 0, 0))],
        out_specs=pl.BlockSpec((2, rb, G3), lambda r: (0, r, 0)),
    )
    return pl.pallas_call(
        _gates_kernel,
        out_shape=jax.ShapeDtypeStruct((2, rows, G3), jnp.bfloat16),
        grid_spec=grid_spec,
        compiler_params=_cparams(("parallel",)),
    )(x2d, wih_T, bih)


# ----------------------------------------------------------------------------
# Kernel 2: bidirectional, length-masked GRU recurrence.
#   grid = (direction, time-chunk); direction axis is megacore-parallel.
# ----------------------------------------------------------------------------
def _gru_kernel(Hp, TC, Tp, unroll,
                len_ref, gi_ref, whh_ref, bhhn_ref,
                out_ref, hid_ref, h_scr):
    d = pl.program_id(0)              # 0 = forward, 1 = backward
    c = pl.program_id(1)              # chunk index (in this direction's order)
    nC = pl.num_programs(1)

    @pl.when(c == 0)
    def _():
        h_scr[...] = jnp.zeros_like(h_scr)

    Bp = h_scr.shape[0]
    # Hoisted once per chunk (not per step): mask source and n-gate hidden bias.
    lens_b = jnp.broadcast_to(len_ref[...], (Bp, Hp))           # (Bp, Hp) int32
    bhh_n = jnp.broadcast_to(bhhn_ref[d], (Bp, Hp))             # (Bp, Hp) f32
    sgn = 1 - 2 * d                                             # +1 fwd, -1 bwd
    li0 = d * (TC - 1)
    t0 = d * (Tp - 1) + sgn * c * TC

    def step(i, carry):
        li = li0 + sgn * i                       # row inside the chunk
        t = t0 + sgn * i                         # global timestep processed
        gi = gi_ref[li].astype(jnp.float32)      # (Bp, 3Hp)  precomputed gates
        h = h_scr[...]
        gh = jnp.dot(h.astype(jnp.bfloat16), whh_ref[d],
                     preferred_element_type=jnp.float32)        # bf16 MXU, f32 acc
        # gate slices are 128-aligned (Hp % 128 == 0); PyTorch r,z,n order.
        r = jax.nn.sigmoid(gi[:, :Hp] + gh[:, :Hp])
        z = jax.nn.sigmoid(gi[:, Hp:2 * Hp] + gh[:, Hp:2 * Hp])
        n = jnp.tanh(gi[:, 2 * Hp:] + r * (gh[:, 2 * Hp:] + bhh_n))
        h_new = (1.0 - z) * n + z * h
        m = t < lens_b                           # packed-sequence mask
        h_scr[...] = jnp.where(m, h_new, h)
        out_ref[li] = jnp.where(m, h_new, 0.0).astype(out_ref.dtype)
        return carry

    lax.fori_loop(0, TC, step, 0, unroll=unroll)

    @pl.when(c == nC - 1)
    def _():
        hid_ref[...] = h_scr[...]                # final hidden, written once


def bidir_gru(gi_all, whh_T, bhh_n, lens, TC, unroll):
    """gi_all: (2, Tp, Bp, 3Hp) bf16; whh_T: (2, Hp, 3Hp) bf16;
    bhh_n: (2, 1, Hp) f32; lens: (Bp, 1) int32.
    Returns out (2, Tp, Bp, Hp) bf16 and hid (2, Bp, Hp) f32."""
    _, Tp, Bp, G3 = gi_all.shape
    Hp = G3 // 3
    nC = Tp // TC

    def time_idx(d, c):
        # forward (d=0): chunk c ; backward (d=1): chunk nC-1-c
        return (1 - 2 * d) * c + d * (nC - 1)

    grid_spec = pltpu.PrefetchScalarGridSpec(
        num_scalar_prefetch=0,
        grid=(2, nC),
        in_specs=[
            _wspec((Bp, 1), lambda d, c: (0, 0)),                          # lengths
            pl.BlockSpec((None, TC, Bp, G3),
                         lambda d, c: (d, time_idx(d, c), 0, 0)),          # gi (bf16)
            _wspec((2, Hp, G3), lambda d, c: (0, 0, 0)),                   # whh_T (bf16)
            _wspec((2, 1, Hp), lambda d, c: (0, 0, 0)),                    # b_hn
        ],
        out_specs=(
            pl.BlockSpec((None, TC, Bp, Hp),
                         lambda d, c: (d, time_idx(d, c), 0, 0)),          # outputs
            pl.BlockSpec((None, Bp, Hp), lambda d, c: (d, 0, 0)),          # hidden
        ),
        scratch_shapes=[pltpu.VMEM((Bp, Hp), jnp.float32)],
    )
    out_shapes = (jax.ShapeDtypeStruct((2, Tp, Bp, Hp), jnp.bfloat16),
                  jax.ShapeDtypeStruct((2, Bp, Hp), jnp.float32))
    return pl.pallas_call(
        functools.partial(_gru_kernel, Hp, TC, Tp, unroll),
        out_shape=out_shapes,
        grid_spec=grid_spec,
        compiler_params=_cparams(("parallel", "arbitrary")),
    )(lens, gi_all, whh_T, bhh_n)


# ----------------------------------------------------------------------------
# Kernel 3: fused concat + projection   y = x_f @ W1^T + x_b @ W2^T + b
# ----------------------------------------------------------------------------
def _fused_proj_kernel(xa_ref, xb_ref, w1_ref, w2_ref, b_ref, o_ref):
    xa = xa_ref[...].astype(jnp.bfloat16)
    xb = xb_ref[...].astype(jnp.bfloat16)
    acc = jnp.dot(xa, w1_ref[...], preferred_element_type=jnp.float32)
    acc = acc + jnp.dot(xb, w2_ref[...], preferred_element_type=jnp.float32)
    o_ref[...] = (acc + b_ref[...]).astype(o_ref.dtype)


def fused_projection(x_pair, w1T, w2T, b, rb):
    """x_pair: (2, rows, Hp) -> (rows, Hp) f32. Never materializes the concat."""
    _, rows, Hp = x_pair.shape
    nR = rows // rb
    grid_spec = pltpu.PrefetchScalarGridSpec(
        num_scalar_prefetch=0,
        grid=(nR,),
        in_specs=[pl.BlockSpec((None, rb, Hp), lambda r: (0, r, 0)),
                  pl.BlockSpec((None, rb, Hp), lambda r: (1, r, 0)),
                  _wspec((Hp, Hp), lambda r: (0, 0)),
                  _wspec((Hp, Hp), lambda r: (0, 0)),
                  _wspec((1, Hp), lambda r: (0, 0))],
        out_specs=pl.BlockSpec((rb, Hp), lambda r: (r, 0)),
    )
    return pl.pallas_call(
        _fused_proj_kernel,
        out_shape=jax.ShapeDtypeStruct((rows, Hp), jnp.float32),
        grid_spec=grid_spec,
        compiler_params=_cparams(("parallel",)),
    )(x_pair, x_pair, w1T, w2T, b)


# ----------------------------------------------------------------------------
# Parameter padding helpers (lane-dense layout: per-gate 128-aligned columns)
# ----------------------------------------------------------------------------
def _pad_gate_w(w, H, Hp):
    """PyTorch GRU weight (3H, H) -> transposed (Hp, 3Hp), per-gate padded."""
    wT = w.T.astype(jnp.float32)                       # (H, 3H) cols = [r|z|n]
    out = jnp.zeros((Hp, 3 * Hp), jnp.float32)
    for g in range(3):
        out = out.at[:H, g * Hp:g * Hp + H].set(wT[:, g * H:(g + 1) * H])
    return out


def _pad_gate_b(b, H, Hp):
    out = jnp.zeros((1, 3 * Hp), jnp.float32)
    for g in range(3):
        out = out.at[0, g * Hp:g * Hp + H].set(b[g * H:(g + 1) * H])
    return out


# ----------------------------------------------------------------------------
# ContextRNN forward (glue: embedding gather, padding, kernel composition)
# ----------------------------------------------------------------------------
def context_rnn_forward(input_seqs, input_lengths, params):
    T, B, M = input_seqs.shape
    H = params["embedding"].shape[1]

    # Embedding lookup + sum over memory axis (XLA glue).
    # TODO(synk): fuse the gather+sum into kernel 1 via scalar-prefetched token
    # indices (DMA gather) to drop one (Tp,Bp,Hp) HBM round-trip.
    emb = jnp.take(params["embedding"], input_seqs.reshape(T, B * M), axis=0)
    emb = emb.reshape(T, B, M, H).sum(axis=2).astype(jnp.float32)   # (T, B, H)
    # nn.Dropout is identity in eval mode.
    # TODO(synk): training-mode dropout (pltpu stateful PRNG) not implemented.

    Bp = _round_up(max(B, 8), 8)          # sublane multiple of 8
    Hp = _round_up(H, 128)                # lane multiple of 128
    G3 = 3 * Hp

    # --- VMEM-budget-driven time chunk for the recurrence --------------------
    per_t = Bp * Hp * 16                          # bf16 gi + bf16 out, double-buffered
    static = Hp * G3 * 2 * 2 + 4 * Bp * Hp * 4    # resident weights + scratch/small blocks
    tc_cap = max(1, (_TILE_BUDGET - static) // per_t)
    TC = min(16, tc_cap)
    if T <= 32:                                   # keep >=2 chunks so gi DMA pipelines
        TC = min(TC, max(1, -(-T // 2)))
    TC = max(1, TC)
    Tp = _round_up(T, TC)
    # Bound unroll by live-value size (gi/gh are each Bp x 3Hp f32).
    unroll = True if Bp * G3 * 4 <= 32 * 1024 else 2

    emb_p = jnp.zeros((Tp, Bp, Hp), jnp.float32).at[:T, :B, :H].set(emb)
    lengths = jnp.asarray(input_lengths, jnp.int32)
    lens_p = jnp.zeros((Bp, 1), jnp.int32).at[:B, 0].set(lengths)

    # --- parameter prep: pad, transpose, fold b_hr/b_hz into b_ih, bf16 weights
    def prep(wih, whh, bih, bhh):
        wih_T = _pad_gate_w(wih, H, Hp)
        whh_T = _pad_gate_w(whh, H, Hp)
        bih_p = _pad_gate_b(bih, H, Hp)
        bhh_p = _pad_gate_b(bhh, H, Hp)
        bih_fold = bih_p.at[:, :2 * Hp].add(bhh_p[:, :2 * Hp])   # fold r/z hidden bias
        bhh_n = bhh_p[:, 2 * Hp:]                                # b_hn stays inside r*( )
        return wih_T, whh_T, bih_fold, bhh_n

    pf = prep(params["wih_f"], params["whh_f"], params["bih_f"], params["bhh_f"])
    pb = prep(params["wih_b"], params["whh_b"], params["bih_b"], params["bhh_b"])
    wih_T = jnp.stack([pf[0], pb[0]]).astype(jnp.bfloat16)       # (2, Hp, 3Hp)
    whh_T = jnp.stack([pf[1], pb[1]]).astype(jnp.bfloat16)       # (2, Hp, 3Hp)
    bih = jnp.stack([pf[2], pb[2]])                              # (2, 1, 3Hp) f32
    bhh_n = jnp.stack([pf[3], pb[3]])                            # (2, 1, Hp)  f32

    # --- kernel 1: hoisted input->hidden matmul (both directions fused) ------
    x2d = emb_p.reshape(Tp * Bp, Hp)
    rb_g = _pick_row_tile(Bp, Tp, 32 * Hp, _TILE_BUDGET - 2 * Hp * G3 * 2 * 2)
    gi_all = precompute_gates(x2d, wih_T, bih, rb=rb_g)          # (2, Tp*Bp, 3Hp) bf16
    gi_all = gi_all.reshape(2, Tp, Bp, G3)

    # --- kernel 2: masked bidirectional GRU recurrence -----------------------
    out_fb, hid = bidir_gru(gi_all, whh_T, bhh_n, lens_p, TC=TC, unroll=unroll)

    # --- kernel 3: fused concat + projection ----------------------------------
    W = params["W_w"]
    w1T = jnp.zeros((Hp, Hp), jnp.float32).at[:H, :H].set(W[:, :H].T).astype(jnp.bfloat16)
    w2T = jnp.zeros((Hp, Hp), jnp.float32).at[:H, :H].set(W[:, H:].T).astype(jnp.bfloat16)
    bW = jnp.zeros((1, Hp), jnp.float32).at[0, :H].set(params["W_b"])

    rb_p = _pick_row_tile(Bp, Tp, 16 * Hp, _TILE_BUDGET - 2 * Hp * Hp * 2 * 2)
    y_out = fused_projection(out_fb.reshape(2, Tp * Bp, Hp), w1T, w2T, bW, rb=rb_p)
    y_hid = fused_projection(hid, w1T, w2T, bW, rb=Bp)

    outputs = y_out.reshape(Tp, Bp, Hp)[:T, :B, :H].transpose(1, 0, 2)   # (B, T, H)
    hidden = y_hid[:B, :H][None]                                         # (1, B, H)
    return outputs, hidden


# ----------------------------------------------------------------------------
# Pure-JAX reference (for correctness check)
# ----------------------------------------------------------------------------
def reference_forward(input_seqs, input_lengths, params):
    T, B, M = input_seqs.shape
    H = params["embedding"].shape[1]
    emb = jnp.take(params["embedding"], input_seqs.reshape(T, B * M), axis=0)
    emb = emb.reshape(T, B, M, H).sum(axis=2).astype(jnp.float32)
    lengths = jnp.asarray(input_lengths, jnp.int32)
    mask = (jnp.arange(T)[:, None] < lengths[None, :]).astype(jnp.float32)[:, :, None]

    def gru_dir(x_seq, m_seq, wih, whh, bih, bhh):
        wih_T, whh_T = wih.T, whh.T

        def step(h, inp):
            x, m = inp
            gi = x @ wih_T + bih
            gh = h @ whh_T + bhh
            r = jax.nn.sigmoid(gi[:, :H] + gh[:, :H])
            z = jax.nn.sigmoid(gi[:, H:2 * H] + gh[:, H:2 * H])
            n = jnp.tanh(gi[:, 2 * H:] + r * gh[:, 2 * H:])
            h_new = (1.0 - z) * n + z * h
            h_out = m * h_new + (1.0 - m) * h
            return h_out, m * h_new

        h0 = jnp.zeros((B, H), jnp.float32)
        return lax.scan(step, h0, (x_seq, m_seq))

    hf, out_f = gru_dir(emb, mask, params["wih_f"], params["whh_f"],
                        params["bih_f"], params["bhh_f"])
    hb, out_b_rev = gru_dir(emb[::-1], mask[::-1], params["wih_b"],
                            params["whh_b"], params["bih_b"], params["bhh_b"])
    out_b = out_b_rev[::-1]

    out_cat = jnp.concatenate([out_f, out_b], axis=-1)              # (T, B, 2H)
    outputs = out_cat @ params["W_w"].T + params["W_b"]
    hidden = (jnp.concatenate([hf, hb], axis=-1) @ params["W_w"].T
              + params["W_b"])[None]
    return outputs.transpose(1, 0, 2), hidden


# ----------------------------------------------------------------------------
def init_params(key, vocab, H):
    ks = jax.random.split(key, 11)
    s = 0.1

    def w(k, shape):
        return s * jax.random.normal(k, shape, jnp.float32)

    emb = w(ks[0], (vocab, H)).at[PAD_token].set(0.0)   # padding_idx row = 0
    return dict(
        embedding=emb,
        wih_f=w(ks[1], (3 * H, H)), whh_f=w(ks[2], (3 * H, H)),
        bih_f=w(ks[3], (3 * H,)), bhh_f=w(ks[4], (3 * H,)),
        wih_b=w(ks[5], (3 * H, H)), whh_b=w(ks[6], (3 * H, H)),
        bih_b=w(ks[7], (3 * H,)), bhh_b=w(ks[8], (3 * H,)),
        W_w=w(ks[9], (H, 2 * H)), W_b=w(ks[10], (H,)),
    )


if __name__ == "__main__":
    T, B, M, V, H = 8, 4, 6, 50, 32
    key = jax.random.PRNGKey(0)
    k_tok, k_par = jax.random.split(key)

    input_seqs = jax.random.randint(k_tok, (T, B, M), 0, V, dtype=jnp.int32)
    input_lengths = [8, 7, 5, 3]   # sorted descending (pack_padded_sequence)
    params = init_params(k_par, V, H)

    outputs, hidden = context_rnn_forward(input_seqs, input_lengths, params)
    jax.block_until_ready((outputs, hidden))

    out_ref, hid_ref_ = reference_forward(input_seqs, input_lengths, params)
    assert outputs.shape == (B, T, H) and hidden.shape == (1, B, H)
    assert np.allclose(np.asarray(outputs), np.asarray(out_ref),
                       atol=1e-2, rtol=1e-2)
    assert np.allclose(np.asarray(hidden), np.asarray(hid_ref_),
                       atol=1e-2, rtol=1e-2)
    print("KERNEL_OK")
</pallas_src>

<mosaic_0001>
module attributes {stable_mosaic.version = 11 : i64} {
  func.func @_copy_probe_kernel(%arg0: i32, %arg1: memref<8x128xf32, #tpu.memory_space<vmem>>, %arg2: memref<8x128xf32, #tpu.memory_space<vmem>>) attributes {dimension_semantics = [#tpu.dimension_semantics<arbitrary>], iteration_bounds = array<i64: 1>, scalar_prefetch = 0 : i64, scratch_operands = 0 : i64, tpu.core_type = #tpu.core_type<tc>, window_params = [{pipeline_mode = #tpu.pipeline_mode<synchronous>, transform_indices = @transform_0, window_bounds = array<i64: 8, 128>}, {pipeline_mode = #tpu.pipeline_mode<synchronous>, transform_indices = @transform_1, window_bounds = array<i64: 8, 128>}]} {
    %c0 = arith.constant 0 : index
    %c0_0 = arith.constant 0 : index
    %0 = vector.load %arg1[%c0, %c0_0] : memref<8x128xf32, #tpu.memory_space<vmem>>, vector<8x128xf32>
    %c0_1 = arith.constant 0 : index
    %c0_2 = arith.constant 0 : index
    %1 = vector.load %arg2[%c0_1, %c0_2] : memref<8x128xf32, #tpu.memory_space<vmem>>, vector<8x128xf32>
    tpu.vector_store %arg2[%c0_1, %c0_2], %0 {strides = array<i32>} : memref<8x128xf32, #tpu.memory_space<vmem>>, vector<8x128xf32>,
    return
  }
  func.func @transform_0(%arg0: i32) -> (i32, i32) {
    %c0_i32 = arith.constant 0 : i32
    %c0_i32_0 = arith.constant 0 : i32
    %c0_i32_1 = arith.constant 0 : i32
    return %c0_i32, %c0_i32_0 : i32, i32
  }
  func.func @transform_1(%arg0: i32) -> (i32, i32) {
    %c0_i32 = arith.constant 0 : i32
    %c0_i32_0 = arith.constant 0 : i32
    %c0_i32_1 = arith.constant 0 : i32
    return %c0_i32, %c0_i32_0 : i32, i32
  }
}

module attributes {stable_mosaic.version = 11 : i64} {
  func.func @_gates_kernel(%arg0: i32, %arg1: memref<64x128xf32, #tpu.memory_space<vmem>>, %arg2: memref<2x128x384xbf16, #tpu.memory_space<vmem>>, %arg3: memref<2x1x384xf32, #tpu.memory_space<vmem>>, %arg4: memref<2x64x384xbf16, #tpu.memory_space<vmem>>) attributes {dimension_semantics = [#tpu.dimension_semantics<parallel>], iteration_bounds = array<i64: 1>, scalar_prefetch = 0 : i64, scratch_operands = 0 : i64, tpu.core_type = #tpu.core_type<tc>, window_params = [{transform_indices = @transform_0, window_bounds = array<i64: 64, 128>}, {pipeline_mode = #tpu.pipeline_mode<synchronous>, transform_indices = @transform_1, window_bounds = array<i64: 2, 128, 384>}, {pipeline_mode = #tpu.pipeline_mode<synchronous>, transform_indices = @transform_2, window_bounds = array<i64: 2, 1, 384>}, {transform_indices = @transform_3, window_bounds = array<i64: 2, 64, 384>}]} {
    %c0 = arith.constant 0 : index
    %c0_0 = arith.constant 0 : index
    %0 = vector.load %arg1[%c0, %c0_0] : memref<64x128xf32, #tpu.memory_space<vmem>>, vector<64x128xf32>
    %1 = arith.truncf %0 : vector<64x128xf32> to vector<64x128xbf16>
    %c0_1 = arith.constant 0 : index
    %c0_2 = arith.constant 0 : index
    %c0_3 = arith.constant 0 : index
    %2 = vector.load %arg2[%c0_1, %c0_2, %c0_3] : memref<2x128x384xbf16, #tpu.memory_space<vmem>>, vector<1x128x384xbf16>
    %3 = vector.shape_cast %2 : vector<1x128x384xbf16> to vector<128x384xbf16>
    %cst = arith.constant dense<0.000000e+00> : vector<64x384xf32>
    %4 = tpu.matmul %1, %3, %cst {dimension_numbers = #tpu.dot_dimension_numbers<[1], [0], [0], [1], [0, 0, 1, 1], [], []>} : vector<64x128xbf16>, vector<128x384xbf16>, vector<64x384xf32> -> vector<64x384xf32>
    %c0_4 = arith.constant 0 : index
    %c0_5 = arith.constant 0 : index
    %c0_6 = arith.constant 0 : index
    %5 = vector.load %arg3[%c0_4, %c0_5, %c0_6] : memref<2x1x384xf32, #tpu.memory_space<vmem>>, vector<1x1x384xf32>
    %6 = vector.shape_cast %5 : vector<1x1x384xf32> to vector<1x384xf32>
    %7 = vector.broadcast %6 : vector<1x384xf32> to vector<64x384xf32>
    %8 = arith.addf %4, %7 : vector<64x384xf32>
    %c1 = arith.constant 1 : index
    %c0_7 = arith.constant 0 : index
    %c0_8 = arith.constant 0 : index
    %9 = vector.load %arg2[%c1, %c0_7, %c0_8] : memref<2x128x384xbf16, #tpu.memory_space<vmem>>, vector<1x128x384xbf16>
    %10 = vector.shape_cast %9 : vector<1x128x384xbf16> to vector<128x384xbf16>
    %cst_9 = arith.constant dense<0.000000e+00> : vector<64x384xf32>
    %11 = tpu.matmul %1, %10, %cst_9 {dimension_numbers = #tpu.dot_dimension_numbers<[1], [0], [0], [1], [0, 0, 1, 1], [], []>} : vector<64x128xbf16>, vector<128x384xbf16>, vector<64x384xf32> -> vector<64x384xf32>
    %c1_10 = arith.constant 1 : index
    %c0_11 = arith.constant 0 : index
    %c0_12 = arith.constant 0 : index
    %12 = vector.load %arg3[%c1_10, %c0_11, %c0_12] : memref<2x1x384xf32, #tpu.memory_space<vmem>>, vector<1x1x384xf32>
    %13 = vector.shape_cast %12 : vector<1x1x384xf32> to vector<1x384xf32>
    %14 = vector.broadcast %13 : vector<1x384xf32> to vector<64x384xf32>
    %15 = arith.addf %11, %14 : vector<64x384xf32>
    %16 = arith.truncf %8 : vector<64x384xf32> to vector<64x384xbf16>
    %c0_13 = arith.constant 0 : index
    %c0_14 = arith.constant 0 : index
    %c0_15 = arith.constant 0 : index
    %17 = vector.load %arg4[%c0_13, %c0_14, %c0_15] : memref<2x64x384xbf16, #tpu.memory_space<vmem>>, vector<1x64x384xbf16>
    %18 = vector.shape_cast %17 : vector<1x64x384xbf16> to vector<64x384xbf16>
    %19 = vector.shape_cast %16 : vector<64x384xbf16> to vector<1x64x384xbf16>
    tpu.vector_store %arg4[%c0_13, %c0_14, %c0_15], %19 {strides = array<i32>} : memref<2x64x384xbf16, #tpu.memory_space<vmem>>, vector<1x64x384xbf16>,
    %20 = arith.truncf %15 : vector<64x384xf32> to vector<64x384xbf16>
    %c1_16 = arith.constant 1 : index
    %c0_17 = arith.constant 0 : index
    %c0_18 = arith.constant 0 : index
    %21 = vector.load %arg4[%c1_16, %c0_17, %c0_18] : memref<2x64x384xbf16, #tpu.memory_space<vmem>>, vector<1x64x384xbf16>
    %22 = vector.shape_cast %21 : vector<1x64x384xbf16> to vector<64x384xbf16>
    %23 = vector.shape_cast %20 : vector<64x384xbf16> to vector<1x64x384xbf16>
    tpu.vector_store %arg4[%c1_16, %c0_17, %c0_18], %23 {strides = array<i32>} : memref<2x64x384xbf16, #tpu.memory_space<vmem>>, vector<1x64x384xbf16>,
    return
  }
  func.func @transform_0(%arg0: i32) -> (i32, i32) {
    %c0_i32 = arith.constant 0 : i32
    %c0_i32_0 = arith.constant 0 : i32
    return %arg0, %c0_i32 : i32, i32
  }
  func.func @transform_1(%arg0: i32) -> (i32, i32, i32) {
    %c0_i32 = arith.constant 0 : i32
    %c0_i32_0 = arith.constant 0 : i32
    %c0_i32_1 = arith.constant 0 : i32
    %c0_i32_2 = arith.constant 0 : i32
    return %c0_i32, %c0_i32_0, %c0_i32_1 : i32, i32, i32
  }
  func.func @transform_2(%arg0: i32) -> (i32, i32, i32) {
    %c0_i32 = arith.constant 0 : i32
    %c0_i32_0 = arith.constant 0 : i32
    %c0_i32_1 = arith.constant 0 : i32
    %c0_i32_2 = arith.constant 0 : i32
    return %c0_i32, %c0_i32_0, %c0_i32_1 : i32, i32, i32
  }
  func.func @transform_3(%arg0: i32) -> (i32, i32, i32) {
    %c0_i32 = arith.constant 0 : i32
    %c0_i32_0 = arith.constant 0 : i32
    %c0_i32_1 = arith.constant 0 : i32
    return %c0_i32, %arg0, %c0_i32_0 : i32, i32, i32
  }
}

</mosaic_0001>

<bundles_post_ra>
// kernel: tpu_custom_call.1
= control target key start
LH: loop header
LB: loop body
LE: loop exit
PB: predicated region body
PF: predicated region fallthrough
CT: control target
= control target key end

     0   :  { %6 = vsyncpa [#allocation3], 0  ;;  %s124_s0 = inlined_call_operand.hbm [shape: f32[8,128], index: 0, kind: input, shape index: {}]   ;;  %s125_s1 = inlined_call_operand.hbm [shape: f32[8,128], index: 1, kind: output, shape index: {}]  }
   0x1   :  { %7 = vsyncpa [#allocation4], 0  ;;  %s88_s6 = smov [#allocation2]   ;;  %s40_s10 = scalar_lea.hbm %s124_s0, 128 }
   0x2   :  { %s14_s7 = sshll.u32 %s88_s6, 4  ;;  %p41_p0 = scmp.ne.s32.totalorder %s124_s0, %s40_s10  ;;  %s15_s7 = int_to_ptr.vmem [resolvable:$true] %s14_s7 }
   0x3   :  { %p44_p1 = scmp.lt.u32.totalorder %s40_s10, %s124_s0 }
   0x5   :  { %p46_p2 = pnand %p44_p1, %p41_p0 }
   0x7   :  { %49 = shalt.err (!%p46_p2)
}
   0x8   :  { %s50_s15 = scalar_lea.vmem %s15_s7, 128  ;;  %p55_p4 = scmp.lt.s32.totalorder %s15_s7, %s15_s7 }
   0x9   :  { %p51_p3 = scmp.ne.s32.totalorder %s15_s7, %s50_s15  ;;  %p56_p5 = scmp.lt.s32.totalorder %s50_s15, %s50_s15 }
   0xb   :  { %p57_p6 = por %p56_p5, %p55_p4 }
   0xd   :  { %p58_p7 = pnand %p57_p6, %p51_p3 }
   0xf   :  { %61 = shalt.err (!%p58_p7)
}
  0x10   :  { %17 = dma.hbm_to_vmem [thread:$0]  %s124_s0, 128, %s15_s7, [#allocation3]  }
  0x11   :  { %84 = dma.done.wait [#allocation3], 128  }
  0x12   :  { %85 = vsyncadd [#allocation3], 4294967168  ;;  %s89_s18 = smov [#allocation5]   ;;  %v21_v0 = vld [vmem:[#allocation2] sm:$0xff] }
  0x13   :  { %s29_s19 = sshll.u32 %s89_s18, 4  ;;  %22 = vst [vmem:[#allocation5] sm:$0xff] %v21_v0  ;;  %s30_s19 = int_to_ptr.vmem [resolvable:$true] %s29_s19 }
  0x14   :  { %s62_s20 = scalar_lea.vmem %s30_s19, 128  ;;  %p67_p9 = scmp.lt.s32.totalorder %s30_s19, %s30_s19 }
  0x15   :  { %p63_p8 = scmp.ne.s32.totalorder %s30_s19, %s62_s20  ;;  %p68_p10 = scmp.lt.s32.totalorder %s62_s20, %s62_s20 }
  0x17   :  { %p69_p11 = por %p68_p10, %p67_p9 }
  0x19   :  { %p70_p12 = pnand %p69_p11, %p63_p8 }
  0x1b   :  { %73 = shalt.err (!%p70_p12)
}
  0x1c   :  { %s74_s23 = scalar_lea.hbm %s125_s1, 128 }
  0x1d   :  { %p75_p13 = scmp.ne.s32.totalorder %s125_s1, %s74_s23  ;;  %p78_p0 = scmp.lt.u32.totalorder %s74_s23, %s125_s1 }
  0x1f   :  { %p80_p1 = pnand %p78_p0, %p75_p13 }
  0x21   :  { %83 = shalt.err (!%p80_p1)
}
  0x22   :  { %32 = dma.vmem_to_hbm [thread:$0]  %s30_s19, 128, %s125_s1, [#allocation4]  }
  0x23   :  { %86 = dma.done.wait [#allocation4], 128  }
  0x24   :  { %87 = vsyncadd [#allocation4], 4294967168 }
  0x25   :  { %36 = vsyncpa [#allocation3], 1 }
  0x26   :  { %37 = vsyncpa [#allocation4], 1 }

// kernel: tpu_custom_call.1
= control target key start
LH: loop header
LB: loop body
LE: loop exit
PB: predicated region body
PF: predicated region fallthrough
CT: control target
= control target key end

     0   :  { %8 = vsyncpa [#allocation3], 0  ;;  %s1387_s0 = inlined_call_operand.hbm [shape: f32[64,128], index: 0, kind: input, shape index: {}]   ;;  %s1388_s1 = inlined_call_operand.hbm [shape: bf16[2,128,384], index: 1, kind: input, shape index: {}]   ;;  %s1389_s2 = inlined_call_operand.vmem [shape: f32[2,1,384], index: 2, kind: input, shape index: {}]   ;;  %s1390_s3 = inlined_call_operand.hbm [shape: bf16[2,64,384], index: 3, kind: output, shape index: {}]  }
   0x1   :  { %9 = vsyncpa [#allocation6], 0 }
   0x2   :  { %10 = vsyncpa [#allocation4], 0  ;;  %s1228_s12 = smov [#allocation2]   ;;  %s1156_s16 = scalar_lea.hbm %s1387_s0, 1024 }
   0x3   :  { %s16_s13 = sshll.u32 %s1228_s12, 4  ;;  %p1157_p0 = scmp.ne.s32.totalorder %s1387_s0, %s1156_s16  ;;  %s17_s13 = int_to_ptr.vmem [resolvable:$true] %s16_s13 }
   0x4   :  { %p1160_p1 = scmp.lt.u32.totalorder %s1156_s16, %s1387_s0 }
   0x6   :  { %p1162_p2 = pnand %p1160_p1, %p1157_p0 }
   0x8   :  { %1165 = shalt.err (!%p1162_p2)
}
   0x9   :  { %s1166_s21 = scalar_lea.vmem %s17_s13, 1024  ;;  %p1171_p4 = scmp.lt.s32.totalorder %s17_s13, %s17_s13 }
   0xa   :  { %p1167_p3 = scmp.ne.s32.totalorder %s17_s13, %s1166_s21  ;;  %p1172_p5 = scmp.lt.s32.totalorder %s1166_s21, %s1166_s21 }
   0xc   :  { %p1173_p6 = por %p1172_p5, %p1171_p4 }
   0xe   :  { %p1174_p7 = pnand %p1173_p6, %p1167_p3 }
  0x10   :  { %1177 = shalt.err (!%p1174_p7)
}
  0x11   :  { %s1229_s22 = smov 128   ;;  %s1230_s23 = smov 8  }
  0x12   :  { %22 = dma.hbm_to_vmem [thread:$0]  %s1387_s0, 1024, %s17_s13, [#allocation3], %s1229_s22, %s1229_s22, %s1230_s23  }
  0x13   :  { %s1231_s26 = smov [#allocation5]   ;;  %s1178_s30 = scalar_lea.hbm %s1388_s1, 6144 }
  0x14   :  { %s28_s27 = sshll.u32 %s1231_s26, 4  ;;  %p1179_p8 = scmp.ne.s32.totalorder %s1388_s1, %s1178_s30  ;;  %s29_s27 = int_to_ptr.vmem [resolvable:$true] %s28_s27 }
  0x15   :  { %p1182_p9 = scmp.lt.u32.totalorder %s1178_s30, %s1388_s1 }
  0x17   :  { %p1184_p10 = pnand %p1182_p9, %p1179_p8 }
  0x19   :  { %1187 = shalt.err (!%p1184_p10)
}
  0x1a   :  { %s1188_s8 = scalar_lea.vmem %s29_s27, 6144  ;;  %p1193_p12 = scmp.lt.s32.totalorder %s29_s27, %s29_s27 }
  0x1b   :  { %p1189_p11 = scmp.ne.s32.totalorder %s29_s27, %s1188_s8  ;;  %p1194_p13 = scmp.lt.s32.totalorder %s1188_s8, %s1188_s8 }
  0x1d   :  { %p1195_p0 = por %p1194_p13, %p1193_p12 }
  0x1f   :  { %p1196_p1 = pnand %p1195_p0, %p1189_p11 }
  0x21   :  { %1199 = shalt.err (!%p1196_p1)
}
  0x22   :  { %s1232_s0 = smov 192   ;;  %s1233_s9 = smov 12  }
  0x23   :  { %34 = dma.hbm_to_vmem [thread:$0]  %s1388_s1, 6144, %s29_s27, [#allocation6], %s1232_s0, %s1232_s0, %s1233_s9  }
  0x24   :  { %1222 = dma.done.wait [#allocation3], 1024  }
  0x25   :  { %1223 = vsyncadd [#allocation3], 4294966272 }
  0x26   :  { %1224 = dma.done.wait [#allocation6], 6144  }
  0x27   :  { %1225 = vsyncadd [#allocation6], 4294961152  ;;  %v1234_v0 = vmov 0   ;;  %v1092_v1 = vld [vmem:[#allocation5 + $0x4] ss:$12 sps:$4 sm:$0xff]   ;;  %v45_v17 = vld [vmem:[#allocation2 + $0x8] sm:$0xff]  ;;  %v90_v61 = vlaneseq }
  0x28   :  { %265 = vmatprep.mubr.bf16.mxu0 %v1234_v0  ;;  %v1094_v2 = vld [vmem:[#allocation5] ss:$12 sps:$4 sm:$0xff]   ;;  %233 = vmatprep.subr.bf16.mxu0 %v1092_v1  ;;  %v1095_v3 = vld [vmem:[#allocation5 + $0x1c] ss:$12 sps:$4 sm:$0xff]   ;;  %v1097_v4 = vld [vmem:[#allocation5 + $0x18] ss:$12 sps:$4 sm:$0xff]  }
  0x29   :  { %234 = vmatpush1.bf16.msra.mxu0 %v1094_v2  ;;  %v1098_v5 = vld [vmem:[#allocation5 + $0x34] ss:$12 sps:$4 sm:$0xff]   ;;  %v1100_v7 = vld [vmem:[#allocation5 + $0x30] ss:$12 sps:$4 sm:$0xff]   ;;  %v1101_v8 = vld [vmem:[#allocation5 + $0x4c] ss:$12 sps:$4 sm:$0xff]  }
  0x2a   :  { %235 = vmatprep.subr.bf16.mxu0 %v1095_v3  ;;  %v1104_v6 = vld [vmem:[#allocation5 + $0x8] ss:$12 sps:$4 sm:$0xff]   ;;  %v1108_v9 = vld [vmem:[#allocation5 + $0x20] ss:$12 sps:$4 sm:$0xff]   ;;  %v1112_v10 = vld [vmem:[#allocation5 + $0x38] ss:$12 sps:$4 sm:$0xff]  }
  0x2b   :  { %1036 = vmatprep.subr.bf16.mxu1 %v1104_v6  ;;  %v1103_v11 = vld [vmem:[#allocation5 + $0x48] ss:$12 sps:$4 sm:$0xff]   ;;  %v1105_v12 = vld [vmem:[#allocation5 + $0x64] ss:$12 sps:$4 sm:$0xff]   ;;  %v1107_v13 = vld [vmem:[#allocation5 + $0x60] ss:$12 sps:$4 sm:$0xff]  }
  0x2c   :  { %1037 = vmatpush3.bf16.msra.mxu1 %v1104_v6  ;;  %v1116_v14 = vld [vmem:[#allocation5 + $0x50] ss:$12 sps:$4 sm:$0xff]   ;;  %v44_v16 = vld [vmem:[#allocation2] sm:$0xff]  ;;  %v1120_v19 = vld [vmem:[#allocation5 + $0x68] ss:$12 sps:$4 sm:$0xff]   ;;  %v1309_v62 = vshrl.u32 %v90_v61, 7 }
  0x2d   :  { %236 = vmatpush1.bf16.msra.mxu0 %v1097_v4  ;;  %1038 = vmatprep.subr.bf16.mxu1 %v1108_v9  ;;  %v1109_v15 = vld [vmem:[#allocation5 + $0x7c] ss:$12 sps:$4 sm:$0xff]   ;;  %v1284_v18 = vpack.c.bf16 %v45_v17, %v44_v16  ;;  %v1111_v20 = vld [vmem:[#allocation5 + $0x78] ss:$12 sps:$4 sm:$0xff]   ;;  %v1113_v21 = vld [vmem:[#allocation5 + $0x94] ss:$12 sps:$4 sm:$0xff]  }
  0x2e   :  { %237 = vmatprep.subr.bf16.mxu0 %v1098_v5  ;;  %v1124_v22 = vld [vmem:[#allocation5 + $0x80] ss:$12 sps:$4 sm:$0xff]   ;;  %v1115_v23 = vld [vmem:[#allocation5 + $0x90] ss:$12 sps:$4 sm:$0xff]   ;;  %v1128_v25 = vld [vmem:[#allocation5 + $0x98] ss:$12 sps:$4 sm:$0xff]  }
  0x2f   :  { %1052 = vmatprep.mubr.bf16.mxu1 %v1284_v18  ;;  %v1117_v24 = vld [vmem:[#allocation5 + $0xac] ss:$12 sps:$4 sm:$0xff]   ;;  %v1119_v26 = vld [vmem:[#allocation5 + $0xa8] ss:$12 sps:$4 sm:$0xff]   ;;  %v1123_v27 = vld [vmem:[#allocation5 + $0xc4] ss:$12 sps:$4 sm:$0xff]  }
  0x30   :  { %1039 = vmatpush3.bf16.msra.mxu1 %v1108_v9  ;;  %v1132_v28 = vld [vmem:[#allocation5 + $0xb0] ss:$12 sps:$4 sm:$0xff]   ;;  %v1121_v29 = vld [vmem:[#allocation5 + $0xc0] ss:$12 sps:$4 sm:$0xff]   ;;  %v1125_v31 = vld [vmem:[#allocation5 + $0xd8] ss:$12 sps:$4 sm:$0xff]  }
  0x31   :  { %238 = vmatpush1.bf16.msra.mxu0 %v1100_v7  ;;  %1040 = vmatprep.subr.bf16.mxu1 %v1112_v10  ;;  %v1127_v30 = vld [vmem:[#allocation5 + $0xdc] ss:$12 sps:$4 sm:$0xff]   ;;  %v46_v32 = vld [vmem:[#allocation2 + $0x10] sm:$0xff]  ;;  %v48_v36 = vld [vmem:[#allocation2 + $0x20] sm:$0xff]  ;;  %v92_v63 = vsub.s32 0, %v1309_v62  ;;  %v96_v2 = vsub.s32 1, %v1309_v62 }
  0x32   :  { %239 = vmatprep.subr.bf16.mxu0 %v1101_v8  ;;  %v47_v33 = vld [vmem:[#allocation2 + $0x18] sm:$0xff]  ;;  %v1136_v34 = vld [vmem:[#allocation5 + $0xc8] ss:$12 sps:$4 sm:$0xff]   ;;  %v1140_v39 = vld [vmem:[#allocation5 + $0xe0] ss:$12 sps:$4 sm:$0xff]  }
  0x33   :  { %v1131_v35 = vld [vmem:[#allocation5 + $0xf4] ss:$12 sps:$4 sm:$0xff]   ;;  %v49_v37 = vld [vmem:[#allocation2 + $0x28] sm:$0xff]  ;;  %v1289_v38 = vpack.c.bf16 %v47_v33, %v46_v32  ;;  %v1129_v40 = vld [vmem:[#allocation5 + $0xf0] ss:$12 sps:$4 sm:$0xff]  }
  0x34   :  { %1041 = vmatpush3.bf16.msra.mxu1 %v1112_v10  ;;  %v1291_v41 = vpack.c.bf16 %v49_v37, %v48_v36  ;;  %v1135_v42 = vld [vmem:[#allocation5 + $0x10c] ss:$12 sps:$4 sm:$0xff]   ;;  %v1133_v44 = vld [vmem:[#allocation5 + $0x108] ss:$12 sps:$4 sm:$0xff]   ;;  %v1139_v47 = vld [vmem:[#allocation5 + $0x124] ss:$12 sps:$4 sm:$0xff]  }
  0x35   :  { %240 = vmatpush1.bf16.msra.mxu0 %v1103_v11  ;;  %1042 = vmatprep.subr.bf16.mxu1 %v1116_v14  ;;  %v1144_v43 = vld [vmem:[#allocation5 + $0xf8] ss:$12 sps:$4 sm:$0xff]   ;;  %v50_v45 = vld [vmem:[#allocation2 + $0x30] sm:$0xff]  ;;  %v1137_v50 = vld [vmem:[#allocation5 + $0x120] ss:$12 sps:$4 sm:$0xff]  }
  0x36   :  { %241 = vmatprep.subr.bf16.mxu0 %v1105_v12  ;;  %v51_v46 = vld [vmem:[#allocation2 + $0x38] sm:$0xff]  ;;  %v1152_v52 = vld [vmem:[#allocation5 + $0x128] ss:$12 sps:$4 sm:$0xff]   ;;  %v1153_v55 = vld [vmem:[#allocation5 + $0x140] ss:$12 sps:$4 sm:$0xff]  }
  0x37   :  { %v55_v48 = vpack.c.bf16 %v51_v46, %v50_v45  ;;  %v1148_v49 = vld [vmem:[#allocation5 + $0x110] ss:$12 sps:$4 sm:$0xff]   ;;  %v1141_v53 = vld [vmem:[#allocation5 + $0x138] ss:$12 sps:$4 sm:$0xff]   ;;  %v1147_v54 = vld [vmem:[#allocation5 + $0x154] ss:$12 sps:$4 sm:$0xff]  }
  0x38   :  { %1043 = vmatpush3.bf16.msra.mxu1 %v1116_v14  ;;  %v1143_v51 = vld [vmem:[#allocation5 + $0x13c] ss:$12 sps:$4 sm:$0xff]   ;;  %v1151_v57 = vld [vmem:[#allocation5 + $0x16c] ss:$12 sps:$4 sm:$0xff]   ;;  %v88_v1 = vld [vmem:[%s1389_s2] sm:$0x7] }
  0x39   :  { %242 = vmatpush1.bf16.msra.mxu0 %v1107_v13  ;;  %1044 = vmatprep.subr.bf16.mxu1 %v1120_v19  ;;  %v1145_v56 = vld [vmem:[#allocation5 + $0x150] ss:$12 sps:$4 sm:$0xff]   ;;  %v1154_v58 = vld [vmem:[#allocation5 + $0x158] ss:$12 sps:$4 sm:$0xff]   ;;  %v1149_v59 = vld [vmem:[#allocation5 + $0x168] ss:$12 sps:$4 sm:$0xff]   ;;  %v1318_v3 = vrot.slane %v88_v1, %v92_v63  ;;  %v1322_v4 = vrot.slane %v88_v1, %v96_v2 }
  0x3a   :  { %243 = vmatprep.subr.bf16.mxu0 %v1109_v15  ;;  %v1155_v60 = vld [vmem:[#allocation5 + $0x170] ss:$12 sps:$4 sm:$0xff]  }
  0x3c   :  { %1045 = vmatpush3.bf16.msra.mxu1 %v1120_v19 }
  0x3d   :  { %244 = vmatpush1.bf16.msra.mxu0 %v1111_v20  ;;  %1046 = vmatprep.subr.bf16.mxu1 %v1124_v22 }
  0x3e   :  { %245 = vmatprep.subr.bf16.mxu0 %v1113_v21 }
  0x40   :  { %1047 = vmatpush3.bf16.msra.mxu1 %v1124_v22 }
  0x41   :  { %246 = vmatpush1.bf16.msra.mxu0 %v1115_v23  ;;  %1048 = vmatprep.subr.bf16.mxu1 %v1128_v25 }
  0x42   :  { %247 = vmatprep.subr.bf16.mxu0 %v1117_v24 }
  0x44   :  { %1049 = vmatpush3.bf16.msra.mxu1 %v1128_v25 }
  0x45   :  { %248 = vmatpush1.bf16.msra.mxu0 %v1119_v26  ;;  %1050 = vmatprep.subr.bf16.mxu1 %v1132_v28 }
  0x46   :  { %550 = vmatprep.subr.bf16.mxu0 %v1123_v27 }
  0x48   :  { %266 = vmatmul.mubr.bf16.vlgmr.msra.gmra.mrb[0].mxu0 %v1284_v18  ;;  %1051 = vmatpush3.bf16.msra.mxu1 %v1132_v28 }
  0x49   :  { %551 = vmatpush1.bf16.msra.mxu0 %v1121_v29  ;;  %275 = vmatprep.mubr.bf16.mxu0 %v1234_v0 }
  0x4a   :  { %552 = vmatprep.subr.bf16.mxu0 %v1127_v30  ;;  %1060 = vmatprep.subr.bf16.mxu1 %v1136_v34 }
  0x4b   :  { %1053 = vmatmul.mubr.bf16.vlgmr.msra.gmra.mrb[0].mxu1 %v1289_v38 }
  0x4c   :  { %1061 = vmatpush3.bf16.msra.mxu1 %v1136_v34  ;;  %1056 = vmatprep.mubr.bf16.mxu1 %v1291_v41 }
  0x4d   :  { %553 = vmatpush1.bf16.msra.mxu0 %v1125_v31  ;;  %1062 = vmatprep.subr.bf16.mxu1 %v1140_v39 }
  0x4e   :  { %554 = vmatprep.subr.bf16.mxu0 %v1131_v35 }
  0x50   :  { %276 = vmatmul.mubr.bf16.gmra.mrb[4].mxu0 %v1289_v38  ;;  %1063 = vmatpush3.bf16.msra.mxu1 %v1140_v39 }
  0x51   :  { %555 = vmatpush1.bf16.msra.mxu0 %v1129_v40  ;;  %285 = vmatprep.mubr.bf16.mxu0 %v1234_v0 }
  0x52   :  { %556 = vmatprep.subr.bf16.mxu0 %v1135_v42  ;;  %1064 = vmatprep.subr.bf16.mxu1 %v1144_v43 }
  0x53   :  { %1057 = vmatmul.mubr.bf16.gmra.mrb[4].mxu1 %v55_v48 }
  0x54   :  { %1065 = vmatpush3.bf16.msra.mxu1 %v1144_v43  ;;  %1076 = vmatprep.mubr.bf16.mxu1 %v1284_v18 }
  0x55   :  { %557 = vmatpush1.bf16.msra.mxu0 %v1133_v44  ;;  %1066 = vmatprep.subr.bf16.mxu1 %v1148_v49 }
  0x56   :  { %558 = vmatprep.subr.bf16.mxu0 %v1139_v47 }
  0x58   :  { %286 = vmatmul.mubr.bf16.gmra.mrb[8].mxu0 %v1291_v41  ;;  %1067 = vmatpush3.bf16.msra.mxu1 %v1148_v49 }
  0x59   :  { %559 = vmatpush1.bf16.msra.mxu0 %v1137_v50  ;;  %295 = vmatprep.mubr.bf16.mxu0 %v1234_v0 }
  0x5a   :  { %560 = vmatprep.subr.bf16.mxu0 %v1143_v51  ;;  %1068 = vmatprep.subr.bf16.mxu1 %v1152_v52 }
  0x5c   :  { %1069 = vmatpush3.bf16.msra.mxu1 %v1152_v52 }
  0x5d   :  { %561 = vmatpush1.bf16.msra.mxu0 %v1141_v53  ;;  %1070 = vmatprep.subr.bf16.mxu1 %v1153_v55 }
  0x5e   :  { %562 = vmatprep.subr.bf16.mxu0 %v1147_v54 }
  0x60   :  { %296 = vmatmul.mubr.bf16.gmra.mrb[12].mxu0 %v55_v48  ;;  %1071 = vmatpush3.bf16.msra.mxu1 %v1153_v55 }
  0x61   :  { %563 = vmatpush1.bf16.msra.mxu0 %v1145_v56  ;;  %582 = vmatprep.mubr.bf16.mxu0 %v1234_v0 }
  0x62   :  { %564 = vmatprep.subr.bf16.mxu0 %v1151_v57  ;;  %1072 = vmatprep.subr.bf16.mxu1 %v1154_v58 }
  0x64   :  { %1073 = vmatpush3.bf16.msra.mxu1 %v1154_v58 }
  0x65   :  { %565 = vmatpush1.bf16.msra.mxu0 %v1149_v59  ;;  %1074 = vmatprep.subr.bf16.mxu1 %v1155_v60 }
  0x68   :  { %583 = vmatmul.mubr.bf16.vlgmr.msra.gmra.mrb[16].mxu0 %v1284_v18  ;;  %1075 = vmatpush3.bf16.msra.mxu1 %v1155_v60 }
  0x69   :  { %592 = vmatprep.mubr.bf16.mxu0 %v1234_v0 }
  0x6b   :  { %1077 = vmatmul.mubr.bf16.vlgmr.msra.gmra.mrb[8].mxu1 %v1289_v38 }
  0x6c   :  { %1080 = vmatprep.mubr.bf16.mxu1 %v1291_v41 }
  0x70   :  { %593 = vmatmul.mubr.bf16.gmra.mrb[20].mxu0 %v1289_v38 }
  0x71   :  { %602 = vmatprep.mubr.bf16.mxu0 %v1234_v0 }
  0x73   :  { %1081 = vmatmul.mubr.bf16.gmra.mrb[12].mxu1 %v55_v48 }
  0x78   :  { %603 = vmatmul.mubr.bf16.gmra.mrb[24].mxu0 %v1291_v41 }
  0x79   :  { %612 = vmatprep.mubr.bf16.mxu0 %v1234_v0  ;;  %v100_v0 = vsub.s32 2, %v1309_v62 }
  0x7b   :  { %v101_v12 = vrot.slane %v88_v1, %v100_v0 }
  0x80   :  { %613 = vmatmul.mubr.bf16.gmra.mrb[28].mxu0 %v55_v48 }
 0x11b   :  { %v267_v5 = vpop.f32.mrb[0].mxu0 }
 0x11c   :  { %v268_v6 = vadd.f32 %v267_v5, %v1318_v3  ;;  %v269_v7 = vpop.f32.mrb[1].mxu0 }
 0x11d   :  { %v270_v8 = vadd.f32 %v269_v7, %v1322_v4  ;;  %v271_v9 = vpop.f32.mrb[2].mxu0  ;;  %v923_v7 = vld [vmem:[%s1389_s2 + $0x3] sm:$0x7]  ;;  %s1235_s2 = smov [#allocation7]  }
 0x11e   :  { %v272_v10 = vadd.f32 %v271_v9, %v1318_v3  ;;  %v273_v11 = vpop.f32.mrb[3].mxu0  ;;  %v1054_v16 = vpop.f32.mrb[0].mxu1  ;;  %s886_s15 = sshll.u32 %s1235_s2, 4  ;;  %s887_s15 = int_to_ptr.vmem [resolvable:$true] %s886_s15 }
 0x11f   :  { %v980_v13 = vpack.c.bf16 %v270_v8, %v268_v6  ;;  %v274_v14 = vadd.f32 %v273_v11, %v1322_v4  ;;  %v349_v17 = vadd.f32 %v1054_v16, %v101_v12  ;;  %v340_v18 = vpop.f32.mrb[1].mxu1  ;;  %s1200_s16 = scalar_lea.vmem %s887_s15, 3072  ;;  %p1205_p3 = scmp.lt.s32.totalorder %s887_s15, %s887_s15 }
 0x120   :  { %v341_v20 = vadd.f32 %v340_v18, %v101_v12  ;;  %v1055_v21 = vpop.f32.mrb[2].mxu1  ;;  %p1201_p2 = scmp.ne.s32.totalorder %s887_s15, %s1200_s16  ;;  %p1206_p4 = scmp.lt.s32.totalorder %s1200_s16, %s1200_s16 }
 0x121   :  { %768 = vst [vmem:[#allocation7] sm:$0xff] %v980_v13  ;;  %v982_v15 = vpack.c.bf16 %v274_v14, %v272_v10  ;;  %v985_v24 = vpack.c.bf16 %v349_v17, %v349_v17  ;;  %v352_v25 = vadd.f32 %v1055_v21, %v101_v12  ;;  %v343_v26 = vpop.f32.mrb[3].mxu1  ;;  %v1352_v14 = vrot.slane %v923_v7, %v96_v2 }
 0x122   :  { %v981_v29 = vpack.c.bf16 %v341_v20, %v341_v20  ;;  %v344_v30 = vadd.f32 %v343_v26, %v101_v12  ;;  %p1207_p5 = por %p1206_p4, %p1205_p3 }
 0x123   :  { %770 = vst [vmem:[#allocation7 + $0xc] sm:$0xff] %v982_v15  ;;  %v277_v19 = vpop.f32.mrb[4].mxu0  ;;  %773 = vst [vmem:[#allocation7 + $0x20] sm:$0xf] %v985_v24  ;;  %v987_v33 = vpack.c.bf16 %v352_v25, %v352_v25 }
 0x124   :  { %v278_v22 = vadd.f32 %v277_v19, %v1318_v3  ;;  %v279_v23 = vpop.f32.mrb[5].mxu0  ;;  %769 = vst [vmem:[#allocation7 + $0x8] sm:$0xf] %v981_v29  ;;  %v983_v36 = vpack.c.bf16 %v344_v30, %v344_v30  ;;  %p1208_p6 = pnand %p1207_p5, %p1201_p2 }
 0x125   :  { %v280_v27 = vadd.f32 %v279_v23, %v1322_v4  ;;  %v281_v28 = vpop.f32.mrb[6].mxu0  ;;  %775 = vst [vmem:[#allocation7 + $0x2c] sm:$0xf] %v987_v33 }
 0x126   :  { %v282_v31 = vadd.f32 %v281_v28, %v1318_v3  ;;  %v283_v32 = vpop.f32.mrb[7].mxu0  ;;  %771 = vst [vmem:[#allocation7 + $0x14] sm:$0xf] %v983_v36  ;;  %v1058_v38 = vpop.f32.mrb[4].mxu1 }
 0x127   :  { %v984_v34 = vpack.c.bf16 %v280_v27, %v278_v22  ;;  %v284_v35 = vadd.f32 %v283_v32, %v1322_v4  ;;  %v365_v39 = vadd.f32 %v1058_v38, %v101_v12  ;;  %v356_v40 = vpop.f32.mrb[5].mxu1 }
 0x128   :  { %v357_v42 = vadd.f32 %v356_v40, %v101_v12  ;;  %v1059_v43 = vpop.f32.mrb[6].mxu1 }
 0x129   :  { %772 = vst [vmem:[#allocation7 + $0x18] sm:$0xff] %v984_v34  ;;  %v986_v37 = vpack.c.bf16 %v284_v35, %v282_v31  ;;  %v993_v46 = vpack.c.bf16 %v365_v39, %v365_v39  ;;  %v368_v47 = vadd.f32 %v1059_v43, %v101_v12  ;;  %v359_v48 = vpop.f32.mrb[7].mxu1 }
 0x12a   :  { %v989_v51 = vpack.c.bf16 %v357_v42, %v357_v42  ;;  %v360_v52 = vadd.f32 %v359_v48, %v101_v12  ;;  %v1348_v12 = vrot.slane %v923_v7, %v92_v63  ;;  %v418_v63 = vrot.slane %v923_v7, %v100_v0 }
 0x12b   :  { %774 = vst [vmem:[#allocation7 + $0x24] sm:$0xff] %v986_v37  ;;  %v287_v41 = vpop.f32.mrb[8].mxu0  ;;  %781 = vst [vmem:[#allocation7 + $0x50] sm:$0xf] %v993_v46  ;;  %v995_v55 = vpack.c.bf16 %v368_v47, %v368_v47 }
 0x12c   :  { %v288_v44 = vadd.f32 %v287_v41, %v1318_v3  ;;  %v289_v45 = vpop.f32.mrb[9].mxu0  ;;  %777 = vst [vmem:[#allocation7 + $0x38] sm:$0xf] %v989_v51  ;;  %v991_v58 = vpack.c.bf16 %v360_v52, %v360_v52 }
 0x12d   :  { %v290_v49 = vadd.f32 %v289_v45, %v1322_v4  ;;  %v291_v50 = vpop.f32.mrb[10].mxu0  ;;  %783 = vst [vmem:[#allocation7 + $0x5c] sm:$0xf] %v995_v55 }
 0x12e   :  { %v292_v53 = vadd.f32 %v291_v50, %v1318_v3  ;;  %v293_v54 = vpop.f32.mrb[11].mxu0  ;;  %779 = vst [vmem:[#allocation7 + $0x44] sm:$0xf] %v991_v58 }
 0x12f   :  { %v988_v56 = vpack.c.bf16 %v290_v49, %v288_v44  ;;  %v294_v57 = vadd.f32 %v293_v54, %v1322_v4 }
 0x131   :  { %776 = vst [vmem:[#allocation7 + $0x30] sm:$0xff] %v988_v56  ;;  %v990_v59 = vpack.c.bf16 %v294_v57, %v292_v53 }
 0x133   :  { %778 = vst [vmem:[#allocation7 + $0x3c] sm:$0xff] %v990_v59  ;;  %v297_v60 = vpop.f32.mrb[12].mxu0 }
 0x134   :  { %v298_v61 = vadd.f32 %v297_v60, %v1318_v3  ;;  %v299_v1 = vpop.f32.mrb[13].mxu0 }
 0x135   :  { %v300_v5 = vadd.f32 %v299_v1, %v1322_v4  ;;  %v301_v6 = vpop.f32.mrb[14].mxu0 }
 0x136   :  { %v302_v8 = vadd.f32 %v301_v6, %v1318_v3  ;;  %v303_v9 = vpop.f32.mrb[15].mxu0 }
 0x137   :  { %v992_v10 = vpack.c.bf16 %v300_v5, %v298_v61  ;;  %v304_v11 = vadd.f32 %v303_v9, %v1322_v4 }
 0x139   :  { %780 = vst [vmem:[#allocation7 + $0x48] sm:$0xff] %v992_v10  ;;  %v994_v13 = vpack.c.bf16 %v304_v11, %v302_v8 }
 0x13b   :  { %782 = vst [vmem:[#allocation7 + $0x54] sm:$0xff] %v994_v13  ;;  %v584_v15 = vpop.f32.mrb[16].mxu0 }
 0x13c   :  { %v585_v16 = vadd.f32 %v584_v15, %v1348_v12  ;;  %v586_v17 = vpop.f32.mrb[17].mxu0 }
 0x13d   :  { %v587_v3 = vadd.f32 %v586_v17, %v1352_v14  ;;  %v588_v18 = vpop.f32.mrb[18].mxu0 }
 0x13e   :  { %v589_v4 = vadd.f32 %v588_v18, %v1348_v12  ;;  %v590_v19 = vpop.f32.mrb[19].mxu0  ;;  %v1078_v22 = vpop.f32.mrb[8].mxu1 }
 0x13f   :  { %v996_v20 = vpack.c.bf16 %v587_v3, %v585_v16  ;;  %v591_v21 = vadd.f32 %v590_v19, %v1352_v14  ;;  %v666_v23 = vadd.f32 %v1078_v22, %v418_v63  ;;  %v657_v24 = vpop.f32.mrb[9].mxu1 }
 0x140   :  { %v658_v26 = vadd.f32 %v657_v24, %v418_v63  ;;  %v1079_v27 = vpop.f32.mrb[10].mxu1 }
 0x141   :  { %865 = vst [vmem:[#allocation7 + $0x60] sm:$0xff] %v996_v20  ;;  %v998_v2 = vpack.c.bf16 %v591_v21, %v589_v4  ;;  %v1001_v30 = vpack.c.bf16 %v666_v23, %v666_v23  ;;  %v669_v31 = vadd.f32 %v1079_v27, %v418_v63  ;;  %v660_v32 = vpop.f32.mrb[11].mxu1 }
 0x142   :  { %v997_v33 = vpack.c.bf16 %v658_v26, %v658_v26  ;;  %v661_v34 = vadd.f32 %v660_v32, %v418_v63 }
 0x143   :  { %867 = vst [vmem:[#allocation7 + $0x6c] sm:$0xff] %v998_v2  ;;  %v594_v25 = vpop.f32.mrb[20].mxu0  ;;  %870 = vst [vmem:[#allocation7 + $0x80] sm:$0xf] %v1001_v30  ;;  %v1003_v37 = vpack.c.bf16 %v669_v31, %v669_v31 }
 0x144   :  { %v595_v28 = vadd.f32 %v594_v25, %v1348_v12  ;;  %v596_v29 = vpop.f32.mrb[21].mxu0  ;;  %866 = vst [vmem:[#allocation7 + $0x68] sm:$0xf] %v997_v33  ;;  %v999_v40 = vpack.c.bf16 %v661_v34, %v661_v34 }
 0x145   :  { %v597_v62 = vadd.f32 %v596_v29, %v1352_v14  ;;  %v598_v0 = vpop.f32.mrb[22].mxu0  ;;  %872 = vst [vmem:[#allocation7 + $0x8c] sm:$0xf] %v1003_v37 }
 0x146   :  { %v599_v35 = vadd.f32 %v598_v0, %v1348_v12  ;;  %v600_v36 = vpop.f32.mrb[23].mxu0  ;;  %868 = vst [vmem:[#allocation7 + $0x74] sm:$0xf] %v999_v40  ;;  %v1082_v42 = vpop.f32.mrb[12].mxu1 }
 0x147   :  { %v1000_v38 = vpack.c.bf16 %v597_v62, %v595_v28  ;;  %v601_v39 = vadd.f32 %v600_v36, %v1352_v14  ;;  %v682_v43 = vadd.f32 %v1082_v42, %v418_v63  ;;  %v673_v44 = vpop.f32.mrb[13].mxu1 }
 0x148   :  { %v674_v46 = vadd.f32 %v673_v44, %v418_v63  ;;  %v1083_v47 = vpop.f32.mrb[14].mxu1 }
 0x149   :  { %869 = vst [vmem:[#allocation7 + $0x78] sm:$0xff] %v1000_v38  ;;  %v1002_v41 = vpack.c.bf16 %v601_v39, %v599_v35  ;;  %v1009_v50 = vpack.c.bf16 %v682_v43, %v682_v43  ;;  %v685_v51 = vadd.f32 %v1083_v47, %v418_v63  ;;  %v676_v52 = vpop.f32.mrb[15].mxu1 }
 0x14a   :  { %v1005_v55 = vpack.c.bf16 %v674_v46, %v674_v46  ;;  %v677_v56 = vadd.f32 %v676_v52, %v418_v63 }
 0x14b   :  { %871 = vst [vmem:[#allocation7 + $0x84] sm:$0xff] %v1002_v41  ;;  %v604_v45 = vpop.f32.mrb[24].mxu0  ;;  %878 = vst [vmem:[#allocation7 + $0xb0] sm:$0xf] %v1009_v50  ;;  %v1011_v59 = vpack.c.bf16 %v685_v51, %v685_v51 }
 0x14c   :  { %v605_v48 = vadd.f32 %v604_v45, %v1348_v12  ;;  %v606_v49 = vpop.f32.mrb[25].mxu0  ;;  %874 = vst [vmem:[#allocation7 + $0x98] sm:$0xf] %v1005_v55  ;;  %v1007_v1 = vpack.c.bf16 %v677_v56, %v677_v56 }
 0x14d   :  { %v607_v53 = vadd.f32 %v606_v49, %v1352_v14  ;;  %v608_v54 = vpop.f32.mrb[26].mxu0  ;;  %880 = vst [vmem:[#allocation7 + $0xbc] sm:$0xf] %v1011_v59 }
 0x14e   :  { %v609_v57 = vadd.f32 %v608_v54, %v1348_v12  ;;  %v610_v58 = vpop.f32.mrb[27].mxu0  ;;  %876 = vst [vmem:[#allocation7 + $0xa4] sm:$0xf] %v1007_v1 }
 0x14f   :  { %v1004_v60 = vpack.c.bf16 %v607_v53, %v605_v48  ;;  %v611_v61 = vadd.f32 %v610_v58, %v1352_v14 }
 0x151   :  { %873 = vst [vmem:[#allocation7 + $0x90] sm:$0xff] %v1004_v60  ;;  %v1006_v5 = vpack.c.bf16 %v611_v61, %v609_v57 }
 0x153   :  { %875 = vst [vmem:[#allocation7 + $0x9c] sm:$0xff] %v1006_v5  ;;  %v614_v6 = vpop.f32.mrb[28].mxu0 }
 0x154   :  { %v615_v7 = vadd.f32 %v614_v6, %v1348_v12  ;;  %v616_v8 = vpop.f32.mrb[29].mxu0 }
 0x155   :  { %v617_v9 = vadd.f32 %v616_v8, %v1352_v14  ;;  %v618_v10 = vpop.f32.mrb[30].mxu0 }
 0x156   :  { %v619_v11 = vadd.f32 %v618_v10, %v1348_v12  ;;  %v620_v13 = vpop.f32.mrb[31].mxu0 }
 0x157   :  { %v1008_v15 = vpack.c.bf16 %v617_v9, %v615_v7  ;;  %v621_v16 = vadd.f32 %v620_v13, %v1352_v14 }
 0x159   :  { %877 = vst [vmem:[#allocation7 + $0xa8] sm:$0xff] %v1008_v15  ;;  %v1010_v17 = vpack.c.bf16 %v621_v16, %v619_v11 }
 0x15b   :  { %879 = vst [vmem:[#allocation7 + $0xb4] sm:$0xff] %v1010_v17 }
 0x15c   :  { %1211 = shalt.err (!%p1208_p6)
}
 0x15d   :  { %s1212_s19 = scalar_lea.hbm %s1390_s3, 3072 }
 0x15e   :  { %p1213_p7 = scmp.ne.s32.totalorder %s1390_s3, %s1212_s19  ;;  %p1216_p8 = scmp.lt.u32.totalorder %s1212_s19, %s1390_s3 }
 0x160   :  { %p1218_p9 = pnand %p1216_p8, %p1213_p7 }
 0x162   :  { %1221 = shalt.err (!%p1218_p9)
}
 0x163   :  { %892 = dma.vmem_to_hbm [thread:$0]  %s887_s15, 3072, %s1390_s3, [#allocation4], %s1232_s0, %s1232_s0, %s1233_s9  }
 0x164   :  { %1226 = dma.done.wait [#allocation4], 3072  }
 0x165   :  { %1227 = vsyncadd [#allocation4], 4294964224 }
 0x166   :  { %896 = vsyncpa [#allocation3], 1 }
 0x167   :  { %897 = vsyncpa [#allocation6], 1 }
 0x168   :  { %898 = vsyncpa [#allocation4], 1 }

</bundles_post_ra>
